<compile_context>
chip_gen: v6e
topology: v6e:2x2x1
jax: 0.10.0
libtpu: 0.0.40
codegen_flags: <defaults>
</compile_context>

<pallas_src>
import math
import functools

import jax
import jax.numpy as jnp
from jax import lax
from jax.experimental import pallas as pl
from jax.experimental.pallas import tpu as pltpu


def _cross_attn_kernel(x_ref, q_ref, gamma_ref, beta_ref,
                       wkv_ref, bkv_ref, wo_ref, bo_ref,
                       out_ref, attn_ref, *, n_head, d_k, eps, mm_dtype):
    """One grid step processes a chunk of BC batch elements.

    Ref shapes (per step):
      x_ref    : (BC, S, D)
      q_ref    : (BC, H, Lq, d_k)   batch-major learnt queries (scale folded into Wk/bk)
      gamma/beta/bo : (1, D)
      wkv_ref  : (H, D, 2*d_k)      fused [K|V] projection weights, K half pre-scaled
      bkv_ref  : (H, 1, 2*d_k)      fused [K|V] biases, K half pre-scaled
      wo_ref   : (H, d_k, D)
      out_ref  : (BC, Lq, D)
      attn_ref : (BC, H, Lq, S)     batch-major -> no post-kernel transpose
    """
    BC, S, D = x_ref.shape
    H = n_head
    Lq = q_ref.shape[2]
    G = BC * H

    cast = (lambda a: a) if mm_dtype is None else (lambda a: a.astype(mm_dtype))

    # ---- LayerNorm over the feature axis (f32 on VPU/EUP) ----
    x = x_ref[...]
    mean = jnp.mean(x, axis=-1, keepdims=True)
    cent = x - mean
    var = jnp.mean(cent * cent, axis=-1, keepdims=True)
    xn = cent * lax.rsqrt(var + eps) * gamma_ref[...] + beta_ref[...]        # (BC, S, D)

    # ---- fused K/V projection, grouped batch-major g = (batch, head) ----
    # Mosaic's batched dot needs explicit, equal batch dims on both operands, so both
    # are replicated along the g axis (untiled-axis replication only; cast first so a
    # bf16 path halves the replicated footprint). An implicitly-broadcast einsum form
    # ('bsd,hdf->bhsf') does not lower on Mosaic, and batch-major grouping is what lets
    # the attn store go out without the HBM transpose.
    # TODO(synk): at production sizes control this footprint via batch_chunk (VMEM
    # picker in the wrapper) rather than a different contraction form.
    xn_g = jnp.broadcast_to(cast(xn)[:, None], (BC, H, S, D)).reshape(G, S, D)
    wkv_g = jnp.broadcast_to(cast(wkv_ref[...])[None],
                             (BC, H, D, 2 * d_k)).reshape(G, D, 2 * d_k)
    kv = jnp.einsum("gsd,gdf->gsf", xn_g, wkv_g,
                    preferred_element_type=jnp.float32).reshape(BC, H, S, 2 * d_k)
    kv = kv + bkv_ref[...]                                   # per-head fused [K|V] bias
    k_g = kv[..., :d_k].reshape(G, S, d_k)                   # K half (1/sqrt(d_k) folded in)
    v_g = kv[..., d_k:].reshape(G, S, d_k)                   # V half

    q_g = q_ref[...].reshape(G, Lq, d_k)                     # batch-major matches k_g / v_g

    # ---- scaled dot-product attention, batched over g = (batch, head) ----
    s = jnp.einsum("gqd,gkd->gqk", cast(q_g), cast(k_g),
                   preferred_element_type=jnp.float32)        # (G, Lq, S)
    s = s - jnp.max(s, axis=-1, keepdims=True)
    e = jnp.exp(s)
    p = e * pl.reciprocal(jnp.sum(e, axis=-1, keepdims=True), approx=True)

    # Single coalesced, batch-major attn store -> out_shape is already (B, H, Lq, S).
    # TODO(synk): for S < 128 a lane-dense (Lq*S) slab would avoid masked vst; skipped
    # because the minor-dim reshape relayout is not guaranteed to lower cleanly.
    attn_ref[...] = p.reshape(BC, H, Lq, S)

    ctx = jnp.einsum("gqk,gkd->gqd", cast(p), cast(v_g),
                     preferred_element_type=jnp.float32)      # (G, Lq, d_k)
    ctx4 = ctx.reshape(BC, H, Lq, d_k)

    # ---- output projection: head reduction accumulated across H plain 2-D matmuls ----
    # (no (H, BC*Lq, D) f32 intermediate and no separate VPU reduce over heads)
    out2 = jnp.dot(cast(ctx4[:, 0].reshape(BC * Lq, d_k)), cast(wo_ref[0]),
                   preferred_element_type=jnp.float32)
    for h in range(1, H):                                     # static unroll, H is small
        out2 = out2 + jnp.dot(cast(ctx4[:, h].reshape(BC * Lq, d_k)), cast(wo_ref[h]),
                              preferred_element_type=jnp.float32)
    out_ref[...] = (out2 + bo_ref[...]).reshape(BC, Lq, D)


def prepare_cross_attention_params(params, *, n_head):
    """One-time weight re-layout (hoisted out of the per-call hot path).

    nn.Linear stores (out, in); x @ W^T uses W.T = (in, out). The K projection and
    bias absorb 1/sqrt(d_k) so no score scaling happens inside the kernel.
    """
    D = params["wk"].shape[0]
    d_k = D // n_head
    inv_scale = 1.0 / math.sqrt(d_k)
    wk_h = params["wk"].T.reshape(D, n_head, d_k).transpose(1, 0, 2) * inv_scale
    wv_h = params["wv"].T.reshape(D, n_head, d_k).transpose(1, 0, 2)
    bk_h = params["bk"].reshape(n_head, 1, d_k) * inv_scale
    bv_h = params["bv"].reshape(n_head, 1, d_k)
    return {
        "wkv": jnp.concatenate([wk_h, wv_h], axis=-1),        # (H, D, 2*d_k)
        "bkv": jnp.concatenate([bk_h, bv_h], axis=-1),        # (H, 1, 2*d_k)
        "wo": params["wo"].T.reshape(n_head, d_k, D),         # (H, d_k, D)
        "bo": params["bo"].reshape(1, D),
        "gamma": params["ln_gamma"].reshape(1, D),
        "beta": params["ln_beta"].reshape(1, D),
    }


def _vmem_bytes_estimate(bc, S, Lq, D, H, d_k):
    f32 = 4
    G = bc * H
    io_blocks = 2 * f32 * (bc * S * D + bc * H * Lq * d_k + bc * Lq * D + bc * H * Lq * S)
    weights = 2 * f32 * (H * D * 2 * d_k + H * 2 * d_k + H * d_k * D + 3 * D)
    temps = f32 * (G * S * D               # replicated xn
                   + G * D * 2 * d_k       # replicated fused weights
                   + 2 * G * S * 2 * d_k   # kv / biased kv
                   + 2 * G * S * d_k       # k, v
                   + 3 * G * Lq * S        # scores / exp / probs
                   + G * Lq * d_k          # ctx
                   + 2 * bc * Lq * D)      # out accumulator + staging
    return io_blocks + weights + temps


def _pick_batch_chunk(B, S, Lq, D, H, d_k, budget_bytes):
    divisors = [c for c in range(B, 0, -1) if B % c == 0]
    # Prefer a grid extent >= 2 (both v7x TensorCores busy), then the largest chunk
    # that fits the VMEM budget (amortizes the ~0.35us per-step overhead).
    preferred = [c for c in divisors if B // c >= 2] or divisors
    for c in preferred:
        if _vmem_bytes_estimate(c, S, Lq, D, H, d_k) <= budget_bytes:
            return c
    return 1


def cross_attention_block(x, learnt_q, prepared, *, n_head, eps=1e-5,
                          batch_chunk=None, mm_dtype=None,
                          vmem_budget_bytes=40 * 1024 * 1024):
    """x: (B, S, D) f32, learnt_q: (B, Lq, D) f32, prepared: prepare_cross_attention_params.

    Returns (out, attn) with out (B, Lq, D), attn (B, n_head, Lq, S).
    mm_dtype=jnp.bfloat16 is worthwhile on v6e/v7x once D/d_k reach MXU width; keep
    None (exact f32) on v5e / small configs.
    """
    B, S, D = x.shape
    Lq = learnt_q.shape[1]
    H = n_head
    d_k = D // n_head

    if batch_chunk is None:
        batch_chunk = _pick_batch_chunk(B, S, Lq, D, H, d_k, vmem_budget_bytes)
    assert B % batch_chunk == 0, "batch_chunk must divide B"
    BC = batch_chunk
    nb = B // BC

    # Learnt queries to batch-major (B, H, Lq, d_k): small tensor, free layout plumbing
    # (could also be hoisted into prepare_* since learnt_q is a model parameter upstream).
    q_bm = learnt_q.reshape(B, Lq, H, d_k).transpose(0, 2, 1, 3)

    kernel = functools.partial(_cross_attn_kernel, n_head=H, d_k=d_k, eps=eps,
                               mm_dtype=mm_dtype)

    out, attn = pl.pallas_call(
        kernel,
        out_shape=(
            jax.ShapeDtypeStruct((B, Lq, D), jnp.float32),
            jax.ShapeDtypeStruct((B, H, Lq, S), jnp.float32),
        ),
        grid_spec=pltpu.PrefetchScalarGridSpec(
            num_scalar_prefetch=0,
            grid=(nb,),
            in_specs=[
                pl.BlockSpec((BC, S, D), lambda i: (i, 0, 0)),              # x
                pl.BlockSpec((BC, H, Lq, d_k), lambda i: (i, 0, 0, 0)),     # learnt q
                pl.BlockSpec((1, D), lambda i: (0, 0)),                     # gamma
                pl.BlockSpec((1, D), lambda i: (0, 0)),                     # beta
                pl.BlockSpec((H, D, 2 * d_k), lambda i: (0, 0, 0)),         # fused Wkv
                pl.BlockSpec((H, 1, 2 * d_k), lambda i: (0, 0, 0)),         # fused bkv
                pl.BlockSpec((H, d_k, D), lambda i: (0, 0, 0)),             # Wo
                pl.BlockSpec((1, D), lambda i: (0, 0)),                     # bo
            ],
            out_specs=[
                pl.BlockSpec((BC, Lq, D), lambda i: (i, 0, 0)),             # out
                pl.BlockSpec((BC, H, Lq, S), lambda i: (i, 0, 0, 0)),       # attn (batch-major)
            ],
        ),
        compiler_params=pltpu.CompilerParams(
            dimension_semantics=("parallel",),
            vmem_limit_bytes=48 * 1024 * 1024,
        ),
    )(x, q_bm, prepared["gamma"], prepared["beta"],
      prepared["wkv"], prepared["bkv"], prepared["wo"], prepared["bo"])

    return out, attn


def _reference(x, learnt_q, params, *, n_head, eps=1e-5):
    """Pure-JAX reference matching the PyTorch forward (eval mode)."""
    B, S, D = x.shape
    Lq = learnt_q.shape[1]
    d_k = D // n_head
    mean = jnp.mean(x, axis=-1, keepdims=True)
    var = jnp.mean((x - mean) ** 2, axis=-1, keepdims=True)
    xn = (x - mean) / jnp.sqrt(var + eps) * params["ln_gamma"] + params["ln_beta"]
    k = xn @ params["wk"].T + params["bk"]
    v = xn @ params["wv"].T + params["bv"]
    q = learnt_q.reshape(B, Lq, n_head, d_k).transpose(0, 2, 1, 3)
    k = k.reshape(B, S, n_head, d_k).transpose(0, 2, 1, 3)
    v = v.reshape(B, S, n_head, d_k).transpose(0, 2, 1, 3)
    scores = jnp.einsum("bhqd,bhkd->bhqk", q, k) / math.sqrt(d_k)
    attn = jax.nn.softmax(scores, axis=-1)
    ctx = jnp.einsum("bhqk,bhkd->bhqd", attn, v)
    ctx = ctx.transpose(0, 2, 1, 3).reshape(B, Lq, D)
    out = ctx @ params["wo"].T + params["bo"]
    return out, attn


if __name__ == "__main__":
    # Small config: graph_d_model=32, graph_n_head=4; dropout/drop_path -> identity (eval).
    B, S, Lq, D, n_head = 2, 16, 8, 32, 4

    key = jax.random.PRNGKey(0)
    ks = jax.random.split(key, 10)
    scale = 0.1
    params = {
        "ln_gamma": 1.0 + scale * jax.random.normal(ks[8], (D,), jnp.float32),
        "ln_beta": scale * jax.random.normal(ks[9], (D,), jnp.float32),
        "wk": scale * jax.random.normal(ks[0], (D, D), jnp.float32),
        "bk": scale * jax.random.normal(ks[1], (D,), jnp.float32),
        "wv": scale * jax.random.normal(ks[2], (D, D), jnp.float32),
        "bv": scale * jax.random.normal(ks[3], (D,), jnp.float32),
        "wo": scale * jax.random.normal(ks[4], (D, D), jnp.float32),
        "bo": scale * jax.random.normal(ks[5], (D,), jnp.float32),
    }
    x = jax.random.normal(ks[6], (B, S, D), jnp.float32)
    learnt_q = jax.random.normal(ks[7], (B, Lq, D), jnp.float32)

    # One-time param re-layout (hoisted out of the hot path).
    prepared = prepare_cross_attention_params(params, n_head=n_head)

    out, attn = cross_attention_block(x, learnt_q, prepared, n_head=n_head)
    out, attn = jax.block_until_ready((out, attn))

    ref_out, ref_attn = _reference(x, learnt_q, params, n_head=n_head)
    assert out.shape == (B, Lq, D) and attn.shape == (B, n_head, Lq, S)
    # Tolerance accommodates the EUP approximate-reciprocal softmax denominator.
    assert jnp.allclose(out, ref_out, atol=2e-3, rtol=2e-3), "output mismatch"
    assert jnp.allclose(attn, ref_attn, atol=2e-3, rtol=2e-3), "attn mismatch"

    print("KERNEL_OK")
</pallas_src>

<mosaic_0001>
module attributes {stable_mosaic.version = 11 : i64} {
  func.func @_cross_attn_kernel(%arg0: i32, %arg1: memref<1x16x32xf32, #tpu.memory_space<vmem>>, %arg2: memref<1x4x8x8xf32, #tpu.memory_space<vmem>>, %arg3: memref<1x32xf32, #tpu.memory_space<vmem>>, %arg4: memref<1x32xf32, #tpu.memory_space<vmem>>, %arg5: memref<4x32x16xf32, #tpu.memory_space<vmem>>, %arg6: memref<4x1x16xf32, #tpu.memory_space<vmem>>, %arg7: memref<4x8x32xf32, #tpu.memory_space<vmem>>, %arg8: memref<1x32xf32, #tpu.memory_space<vmem>>, %arg9: memref<1x8x32xf32, #tpu.memory_space<vmem>>, %arg10: memref<1x4x8x16xf32, #tpu.memory_space<vmem>>) attributes {dimension_semantics = [#tpu.dimension_semantics<parallel>], iteration_bounds = array<i64: 2>, scalar_prefetch = 0 : i64, scratch_operands = 0 : i64, tpu.core_type = #tpu.core_type<tc>, window_params = [{transform_indices = @transform_0, window_bounds = array<i64: 1, 16, 32>}, {transform_indices = @transform_1, window_bounds = array<i64: 1, 4, 8, 8>}, {pipeline_mode = #tpu.pipeline_mode<synchronous>, transform_indices = @transform_2, window_bounds = array<i64: 1, 32>}, {pipeline_mode = #tpu.pipeline_mode<synchronous>, transform_indices = @transform_3, window_bounds = array<i64: 1, 32>}, {pipeline_mode = #tpu.pipeline_mode<synchronous>, transform_indices = @transform_4, window_bounds = array<i64: 4, 32, 16>}, {pipeline_mode = #tpu.pipeline_mode<synchronous>, transform_indices = @transform_5, window_bounds = array<i64: 4, 1, 16>}, {pipeline_mode = #tpu.pipeline_mode<synchronous>, transform_indices = @transform_6, window_bounds = array<i64: 4, 8, 32>}, {pipeline_mode = #tpu.pipeline_mode<synchronous>, transform_indices = @transform_7, window_bounds = array<i64: 1, 32>}, {transform_indices = @transform_8, window_bounds = array<i64: 1, 8, 32>}, {transform_indices = @transform_9, window_bounds = array<i64: 1, 4, 8, 16>}]} {
    %c0 = arith.constant 0 : index
    %c0_0 = arith.constant 0 : index
    %c0_1 = arith.constant 0 : index
    %0 = vector.load %arg1[%c0, %c0_0, %c0_1] : memref<1x16x32xf32, #tpu.memory_space<vmem>>, vector<1x16x32xf32>
    %cst = arith.constant dense<0.000000e+00> : vector<1x16xf32>
    %1 = vector.multi_reduction <add>, %0, %cst [2] : vector<1x16x32xf32> to vector<1x16xf32>
    %2 = vector.shape_cast %1 : vector<1x16xf32> to vector<1x16x1xf32>
    %cst_2 = arith.constant 3.200000e+01 : f32
    %3 = vector.broadcast %cst_2 : f32 to vector<1x16x1xf32>
    %4 = arith.divf %2, %3 : vector<1x16x1xf32>
    %5 = vector.broadcast %4 : vector<1x16x1xf32> to vector<1x16x32xf32>
    %6 = arith.subf %0, %5 : vector<1x16x32xf32>
    %7 = arith.mulf %6, %6 : vector<1x16x32xf32>
    %cst_3 = arith.constant dense<0.000000e+00> : vector<1x16xf32>
    %8 = vector.multi_reduction <add>, %7, %cst_3 [2] : vector<1x16x32xf32> to vector<1x16xf32>
    %9 = vector.shape_cast %8 : vector<1x16xf32> to vector<1x16x1xf32>
    %cst_4 = arith.constant 3.200000e+01 : f32
    %10 = vector.broadcast %cst_4 : f32 to vector<1x16x1xf32>
    %11 = arith.divf %9, %10 : vector<1x16x1xf32>
    %cst_5 = arith.constant 9.99999974E-6 : f32
    %12 = vector.broadcast %cst_5 : f32 to vector<1x16x1xf32>
    %13 = arith.addf %11, %12 : vector<1x16x1xf32>
    %14 = math.rsqrt %13 : vector<1x16x1xf32>
    %15 = vector.broadcast %14 : vector<1x16x1xf32> to vector<1x16x32xf32>
    %16 = arith.mulf %6, %15 : vector<1x16x32xf32>
    %c0_6 = arith.constant 0 : index
    %c0_7 = arith.constant 0 : index
    %17 = vector.load %arg3[%c0_6, %c0_7] : memref<1x32xf32, #tpu.memory_space<vmem>>, vector<1x32xf32>
    %18 = vector.shape_cast %17 : vector<1x32xf32> to vector<1x1x32xf32>
    %19 = vector.broadcast %18 : vector<1x1x32xf32> to vector<1x16x32xf32>
    %20 = arith.mulf %16, %19 : vector<1x16x32xf32>
    %c0_8 = arith.constant 0 : index
    %c0_9 = arith.constant 0 : index
    %21 = vector.load %arg4[%c0_8, %c0_9] : memref<1x32xf32, #tpu.memory_space<vmem>>, vector<1x32xf32>
    %22 = vector.shape_cast %21 : vector<1x32xf32> to vector<1x1x32xf32>
    %23 = vector.broadcast %22 : vector<1x1x32xf32> to vector<1x16x32xf32>
    %24 = arith.addf %20, %23 : vector<1x16x32xf32>
    %25 = vector.shape_cast %24 : vector<1x16x32xf32> to vector<1x1x16x32xf32>
    %26 = vector.shape_cast %25 : vector<1x1x16x32xf32> to vector<1x1x16x32xf32>
    %27 = vector.broadcast %26 : vector<1x1x16x32xf32> to vector<1x4x16x32xf32>
    %28 = vector.shape_cast %27 : vector<1x4x16x32xf32> to vector<4x16x32xf32>
    %c0_10 = arith.constant 0 : index
    %c0_11 = arith.constant 0 : index
    %c0_12 = arith.constant 0 : index
    %29 = vector.load %arg5[%c0_10, %c0_11, %c0_12] : memref<4x32x16xf32, #tpu.memory_space<vmem>>, vector<4x32x16xf32>
    %30 = vector.shape_cast %29 : vector<4x32x16xf32> to vector<1x4x32x16xf32>
    %31 = vector.shape_cast %30 : vector<1x4x32x16xf32> to vector<4x32x16xf32>
    "tpu.trace_start"() <{level = 10 : i32, message = "gsd,gdf->gsf"}> : () -> ()
    %cst_13 = arith.constant dense<0.000000e+00> : vector<4x16x16xf32>
    %32 = tpu.matmul %28, %31, %cst_13 {dimension_numbers = #tpu.dot_dimension_numbers<[2], [1], [1], [2], [0, 0, 0, 1, 1, 2], [0], [0]>} : vector<4x16x32xf32>, vector<4x32x16xf32>, vector<4x16x16xf32> -> vector<4x16x16xf32>
    "tpu.trace_stop"() : () -> ()
    %33 = vector.shape_cast %32 : vector<4x16x16xf32> to vector<1x4x16x16xf32>
    %c0_14 = arith.constant 0 : index
    %c0_15 = arith.constant 0 : index
    %c0_16 = arith.constant 0 : index
    %34 = vector.load %arg6[%c0_14, %c0_15, %c0_16] : memref<4x1x16xf32, #tpu.memory_space<vmem>>, vector<4x1x16xf32>
    %35 = vector.shape_cast %34 : vector<4x1x16xf32> to vector<1x4x1x16xf32>
    %36 = vector.broadcast %35 : vector<1x4x1x16xf32> to vector<1x4x16x16xf32>
    %37 = arith.addf %33, %36 : vector<1x4x16x16xf32>
    %38 = vector.extract_strided_slice %37 {offsets = [0, 0, 0, 0], sizes = [1, 4, 16, 8], strides = [1, 1, 1, 1]} : vector<1x4x16x16xf32> to vector<1x4x16x8xf32>
    %39 = vector.shape_cast %38 : vector<1x4x16x8xf32> to vector<4x16x8xf32>
    %40 = vector.extract_strided_slice %37 {offsets = [0, 0, 0, 8], sizes = [1, 4, 16, 8], strides = [1, 1, 1, 1]} : vector<1x4x16x16xf32> to vector<1x4x16x8xf32>
    %41 = vector.shape_cast %40 : vector<1x4x16x8xf32> to vector<4x16x8xf32>
    %c0_17 = arith.constant 0 : index
    %c0_18 = arith.constant 0 : index
    %c0_19 = arith.constant 0 : index
    %c0_20 = arith.constant 0 : index
    %42 = vector.load %arg2[%c0_17, %c0_18, %c0_19, %c0_20] : memref<1x4x8x8xf32, #tpu.memory_space<vmem>>, vector<1x4x8x8xf32>
    %43 = vector.shape_cast %42 : vector<1x4x8x8xf32> to vector<4x8x8xf32>
    "tpu.trace_start"() <{level = 10 : i32, message = "gqd,gkd->gqk"}> : () -> ()
    %cst_21 = arith.constant dense<0.000000e+00> : vector<4x8x16xf32>
    %44 = tpu.matmul %43, %39, %cst_21 {dimension_numbers = #tpu.dot_dimension_numbers<[2], [2], [1], [1], [0, 0, 0, 1, 1, 1], [0], [0]>} : vector<4x8x8xf32>, vector<4x16x8xf32>, vector<4x8x16xf32> -> vector<4x8x16xf32>
    "tpu.trace_stop"() : () -> ()
    %cst_22 = arith.constant dense<0xFF800000> : vector<4x8xf32>
    %45 = vector.multi_reduction <maximumf>, %44, %cst_22 [2] : vector<4x8x16xf32> to vector<4x8xf32>
    %46 = vector.shape_cast %45 : vector<4x8xf32> to vector<4x8x1xf32>
    %47 = vector.broadcast %46 : vector<4x8x1xf32> to vector<4x8x16xf32>
    %48 = arith.subf %44, %47 : vector<4x8x16xf32>
    %49 = math.exp %48 : vector<4x8x16xf32>
    %cst_23 = arith.constant dense<0.000000e+00> : vector<4x8xf32>
    %50 = vector.multi_reduction <add>, %49, %cst_23 [2] : vector<4x8x16xf32> to vector<4x8xf32>
    %51 = vector.shape_cast %50 : vector<4x8xf32> to vector<4x8x1xf32>
    %52 = tpu.reciprocal %51 {approx = true} : vector<4x8x1xf32> -> vector<4x8x1xf32>
    %53 = vector.broadcast %52 : vector<4x8x1xf32> to vector<4x8x16xf32>
    %54 = arith.mulf %49, %53 : vector<4x8x16xf32>
    %55 = vector.shape_cast %54 : vector<4x8x16xf32> to vector<1x4x8x16xf32>
    %c0_24 = arith.constant 0 : index
    %c0_25 = arith.constant 0 : index
    %c0_26 = arith.constant 0 : index
    %c0_27 = arith.constant 0 : index
    %56 = vector.load %arg10[%c0_24, %c0_25, %c0_26, %c0_27] : memref<1x4x8x16xf32, #tpu.memory_space<vmem>>, vector<1x4x8x16xf32>
    tpu.vector_store %arg10[%c0_24, %c0_25, %c0_26, %c0_27], %55 {strides = array<i32>} : memref<1x4x8x16xf32, #tpu.memory_space<vmem>>, vector<1x4x8x16xf32>,
    "tpu.trace_start"() <{level = 10 : i32, message = "gqk,gkd->gqd"}> : () -> ()
    %cst_28 = arith.constant dense<0.000000e+00> : vector<4x8x8xf32>
    %57 = tpu.matmul %54, %41, %cst_28 {dimension_numbers = #tpu.dot_dimension_numbers<[2], [1], [1], [2], [0, 0, 0, 1, 1, 2], [0], [0]>} : vector<4x8x16xf32>, vector<4x16x8xf32>, vector<4x8x8xf32> -> vector<4x8x8xf32>
    "tpu.trace_stop"() : () -> ()
    %58 = vector.shape_cast %57 : vector<4x8x8xf32> to vector<1x4x8x8xf32>
    %59 = vector.extract_strided_slice %58 {offsets = [0, 0, 0, 0], sizes = [1, 1, 8, 8], strides = [1, 1, 1, 1]} : vector<1x4x8x8xf32> to vector<1x1x8x8xf32>
    %60 = vector.shape_cast %59 : vector<1x1x8x8xf32> to vector<1x8x8xf32>
    %61 = vector.shape_cast %60 : vector<1x8x8xf32> to vector<8x8xf32>
    %c0_29 = arith.constant 0 : index
    %c0_30 = arith.constant 0 : index
    %c0_31 = arith.constant 0 : index
    %62 = vector.load %arg7[%c0_29, %c0_30, %c0_31] : memref<4x8x32xf32, #tpu.memory_space<vmem>>, vector<1x8x32xf32>
    %63 = vector.shape_cast %62 : vector<1x8x32xf32> to vector<8x32xf32>
    %cst_32 = arith.constant dense<0.000000e+00> : vector<8x32xf32>
    %64 = tpu.matmul %61, %63, %cst_32 {dimension_numbers = #tpu.dot_dimension_numbers<[1], [0], [0], [1], [0, 0, 1, 1], [], []>} : vector<8x8xf32>, vector<8x32xf32>, vector<8x32xf32> -> vector<8x32xf32>
    %65 = vector.extract_strided_slice %58 {offsets = [0, 1, 0, 0], sizes = [1, 1, 8, 8], strides = [1, 1, 1, 1]} : vector<1x4x8x8xf32> to vector<1x1x8x8xf32>
    %66 = vector.shape_cast %65 : vector<1x1x8x8xf32> to vector<1x8x8xf32>
    %67 = vector.shape_cast %66 : vector<1x8x8xf32> to vector<8x8xf32>
    %c1 = arith.constant 1 : index
    %c0_33 = arith.constant 0 : index
    %c0_34 = arith.constant 0 : index
    %68 = vector.load %arg7[%c1, %c0_33, %c0_34] : memref<4x8x32xf32, #tpu.memory_space<vmem>>, vector<1x8x32xf32>
    %69 = vector.shape_cast %68 : vector<1x8x32xf32> to vector<8x32xf32>
    %cst_35 = arith.constant dense<0.000000e+00> : vector<8x32xf32>
    %70 = tpu.matmul %67, %69, %cst_35 {dimension_numbers = #tpu.dot_dimension_numbers<[1], [0], [0], [1], [0, 0, 1, 1], [], []>} : vector<8x8xf32>, vector<8x32xf32>, vector<8x32xf32> -> vector<8x32xf32>
    %71 = arith.addf %64, %70 : vector<8x32xf32>
    %72 = vector.extract_strided_slice %58 {offsets = [0, 2, 0, 0], sizes = [1, 1, 8, 8], strides = [1, 1, 1, 1]} : vector<1x4x8x8xf32> to vector<1x1x8x8xf32>
    %73 = vector.shape_cast %72 : vector<1x1x8x8xf32> to vector<1x8x8xf32>
    %74 = vector.shape_cast %73 : vector<1x8x8xf32> to vector<8x8xf32>
    %c2 = arith.constant 2 : index
    %c0_36 = arith.constant 0 : index
    %c0_37 = arith.constant 0 : index
    %75 = vector.load %arg7[%c2, %c0_36, %c0_37] : memref<4x8x32xf32, #tpu.memory_space<vmem>>, vector<1x8x32xf32>
    %76 = vector.shape_cast %75 : vector<1x8x32xf32> to vector<8x32xf32>
    %cst_38 = arith.constant dense<0.000000e+00> : vector<8x32xf32>
    %77 = tpu.matmul %74, %76, %cst_38 {dimension_numbers = #tpu.dot_dimension_numbers<[1], [0], [0], [1], [0, 0, 1, 1], [], []>} : vector<8x8xf32>, vector<8x32xf32>, vector<8x32xf32> -> vector<8x32xf32>
    %78 = arith.addf %71, %77 : vector<8x32xf32>
    %79 = vector.extract_strided_slice %58 {offsets = [0, 3, 0, 0], sizes = [1, 1, 8, 8], strides = [1, 1, 1, 1]} : vector<1x4x8x8xf32> to vector<1x1x8x8xf32>
    %80 = vector.shape_cast %79 : vector<1x1x8x8xf32> to vector<1x8x8xf32>
    %81 = vector.shape_cast %80 : vector<1x8x8xf32> to vector<8x8xf32>
    %c3 = arith.constant 3 : index
    %c0_39 = arith.constant 0 : index
    %c0_40 = arith.constant 0 : index
    %82 = vector.load %arg7[%c3, %c0_39, %c0_40] : memref<4x8x32xf32, #tpu.memory_space<vmem>>, vector<1x8x32xf32>
    %83 = vector.shape_cast %82 : vector<1x8x32xf32> to vector<8x32xf32>
    %cst_41 = arith.constant dense<0.000000e+00> : vector<8x32xf32>
    %84 = tpu.matmul %81, %83, %cst_41 {dimension_numbers = #tpu.dot_dimension_numbers<[1], [0], [0], [1], [0, 0, 1, 1], [], []>} : vector<8x8xf32>, vector<8x32xf32>, vector<8x32xf32> -> vector<8x32xf32>
    %85 = arith.addf %78, %84 : vector<8x32xf32>
    %c0_42 = arith.constant 0 : index
    %c0_43 = arith.constant 0 : index
    %86 = vector.load %arg8[%c0_42, %c0_43] : memref<1x32xf32, #tpu.memory_space<vmem>>, vector<1x32xf32>
    %87 = vector.broadcast %86 : vector<1x32xf32> to vector<8x32xf32>
    %88 = arith.addf %85, %87 : vector<8x32xf32>
    %89 = vector.shape_cast %88 : vector<8x32xf32> to vector<1x8x32xf32>
    %c0_44 = arith.constant 0 : index
    %c0_45 = arith.constant 0 : index
    %c0_46 = arith.constant 0 : index
    %90 = vector.load %arg9[%c0_44, %c0_45, %c0_46] : memref<1x8x32xf32, #tpu.memory_space<vmem>>, vector<1x8x32xf32>
    tpu.vector_store %arg9[%c0_44, %c0_45, %c0_46], %89 {strides = array<i32>} : memref<1x8x32xf32, #tpu.memory_space<vmem>>, vector<1x8x32xf32>,
    return
  }
  func.func @transform_0(%arg0: i32) -> (i32, i32, i32) {
    %c0_i32 = arith.constant 0 : i32
    %c0_i32_0 = arith.constant 0 : i32
    %c0_i32_1 = arith.constant 0 : i32
    return %arg0, %c0_i32, %c0_i32_0 : i32, i32, i32
  }
  func.func @transform_1(%arg0: i32) -> (i32, i32, i32, i32) {
    %c0_i32 = arith.constant 0 : i32
    %c0_i32_0 = arith.constant 0 : i32
    %c0_i32_1 = arith.constant 0 : i32
    %c0_i32_2 = arith.constant 0 : i32
    return %arg0, %c0_i32, %c0_i32_0, %c0_i32_1 : i32, i32, i32, i32
  }
  func.func @transform_2(%arg0: i32) -> (i32, i32) {
    %c0_i32 = arith.constant 0 : i32
    %c0_i32_0 = arith.constant 0 : i32
    %c0_i32_1 = arith.constant 0 : i32
    return %c0_i32, %c0_i32_0 : i32, i32
  }
  func.func @transform_3(%arg0: i32) -> (i32, i32) {
    %c0_i32 = arith.constant 0 : i32
    %c0_i32_0 = arith.constant 0 : i32
    %c0_i32_1 = arith.constant 0 : i32
    return %c0_i32, %c0_i32_0 : i32, i32
  }
  func.func @transform_4(%arg0: i32) -> (i32, i32, i32) {
    %c0_i32 = arith.constant 0 : i32
    %c0_i32_0 = arith.constant 0 : i32
    %c0_i32_1 = arith.constant 0 : i32
    %c0_i32_2 = arith.constant 0 : i32
    return %c0_i32, %c0_i32_0, %c0_i32_1 : i32, i32, i32
  }
  func.func @transform_5(%arg0: i32) -> (i32, i32, i32) {
    %c0_i32 = arith.constant 0 : i32
    %c0_i32_0 = arith.constant 0 : i32
    %c0_i32_1 = arith.constant 0 : i32
    %c0_i32_2 = arith.constant 0 : i32
    return %c0_i32, %c0_i32_0, %c0_i32_1 : i32, i32, i32
  }
  func.func @transform_6(%arg0: i32) -> (i32, i32, i32) {
    %c0_i32 = arith.constant 0 : i32
    %c0_i32_0 = arith.constant 0 : i32
    %c0_i32_1 = arith.constant 0 : i32
    %c0_i32_2 = arith.constant 0 : i32
    return %c0_i32, %c0_i32_0, %c0_i32_1 : i32, i32, i32
  }
  func.func @transform_7(%arg0: i32) -> (i32, i32) {
    %c0_i32 = arith.constant 0 : i32
    %c0_i32_0 = arith.constant 0 : i32
    %c0_i32_1 = arith.constant 0 : i32
    return %c0_i32, %c0_i32_0 : i32, i32
  }
  func.func @transform_8(%arg0: i32) -> (i32, i32, i32) {
    %c0_i32 = arith.constant 0 : i32
    %c0_i32_0 = arith.constant 0 : i32
    %c0_i32_1 = arith.constant 0 : i32
    return %arg0, %c0_i32, %c0_i32_0 : i32, i32, i32
  }
  func.func @transform_9(%arg0: i32) -> (i32, i32, i32, i32) {
    %c0_i32 = arith.constant 0 : i32
    %c0_i32_0 = arith.constant 0 : i32
    %c0_i32_1 = arith.constant 0 : i32
    %c0_i32_2 = arith.constant 0 : i32
    return %arg0, %c0_i32, %c0_i32_0, %c0_i32_1 : i32, i32, i32, i32
  }
}

</mosaic_0001>

<bundles_post_ra>
// kernel: tpu_custom_call.1
= control target key start
LH: loop header
LB: loop body
LE: loop exit
PB: predicated region body
PF: predicated region fallthrough
CT: control target
= control target key end

     0   :  { %15 = vsyncpa [#allocation3], 0  ;;  %s2687_s0 = inlined_call_operand.vmem [shape: f32[2,16,32], index: 0, kind: input, shape index: {}]   ;;  %s2688_s1 = inlined_call_operand.vmem [shape: f32[2,4,8,8], index: 1, kind: input, shape index: {}]   ;;  %s2689_s2 = inlined_call_operand.vmem [shape: f32[1,32], index: 2, kind: input, shape index: {}]   ;;  %s2690_s3 = inlined_call_operand.vmem [shape: f32[1,32], index: 3, kind: input, shape index: {}]   ;;  %s2691_s4 = inlined_call_operand.vmem [shape: f32[4,32,16], index: 4, kind: input, shape index: {}]   ;;  %s2692_s5 = inlined_call_operand.vmem [shape: f32[4,1,16], index: 5, kind: input, shape index: {}]   ;;  %s2693_s6 = inlined_call_operand.vmem [shape: f32[4,8,32], index: 6, kind: input, shape index: {}]   ;;  %s2694_s7 = inlined_call_operand.vmem [shape: f32[1,32], index: 7, kind: input, shape index: {}]   ;;  %s2695_s8 = inlined_call_operand.hbm [shape: f32[2,8,32], index: 8, kind: output, shape index: {0}]   ;;  %s2696_s9 = inlined_call_operand.hbm [shape: f32[2,4,8,16], index: 9, kind: output, shape index: {1}]  }
   0x1   :  { %17 = vsyncpa [#allocation3 + $0x1], 0 }
   0x2   :  { %18 = vsyncpa [#allocation5], 0 }
   0x3   :  { %20 = vsyncpa [#allocation5 + $0x1], 0  ;;  %s2354_s30 = smov 0   ;;  %s2356_s10 = smov 0  }
   0x4   :  { %s2358_s11 = smov 0   ;;  %s2360_s12 = smov 0  }
   0x5 LB: > { %s2375_s13 = sadd.s32 4294967295, %s2295_s12   ;;  %s1902_s14 = sadd.s32 4294967294, %s2295_s12   ;;  %s2295_s12 = sphi %s2360_s12, %s2703_s12   ;;  %s2291_s11 = sphi %s2358_s11, %s2702_s11   ;;  %s2287_s10 = sphi %s2356_s10, %s2701_s10   ;;  %s2283_s30 = sphi %s2354_s30, %s2700_s30  }
   0x6   : > { %s2379_s15 = sadd.s32 1, %s2295_s12   ;;  %s211_s16 = sadd.s32 1, %s2291_s11 }
   0x7   : > { %s208_s17 = ssub.s32 %s2295_s12, %s2379_s15  ;;  %p221_p0 = scmp.ne.s32.totalorder %s2291_s11, %s2287_s10 }
   0x8   : > { %p209_p1 = scmp.eq.s32.totalorder %s208_s17, 0  ;;  %p222_p2 = scmp.eq.s32.totalorder %s2375_s13, 1 }
   0x9   : > { %p227_p3 = scmp.ne.s32.totalorder %s2287_s10, %s2283_s30  ;;  %p228_p4 = scmp.eq.s32.totalorder %s1902_s14, 1 }
   0xa   : > { %s2390_s18 = scalar_select %p209_p1, %s2291_s11, %s211_s16  }
   0xb   : > { %p2392_p5 = por %p222_p2, %p221_p0  ;;  %p2396_p6 = por %p228_p4, %p227_p3 }
   0xc   : > { %p1905_p7 = scmp.ge.s32.totalorder %s2295_s12, 1  ;;  %p306_p8 = scmp.lt.s32.totalorder %s2295_s12, 3 }
   0xe   : > { %p307_p9 = pnand %p1905_p7, %p306_p8 }
   0xf   : > { %p352_p10 = scmp.lt.s32.totalorder (!%p307_p9), %s2375_s13, 1  ;;  %s2299_s29 = smov (!%p307_p9), 120  }
  0x10   : > { %310 = sbr.rel (%p307_p9) target bundleno = 1460 (0x5b4), region = 52  ;;  %s2565_s14 = sand.u32 (!%p307_p9), 1, %s2287_s10  }
  0x11   : > { %s1907_s16 = sshll.u32 (!%p307_p9), %s2565_s14, 5  ;;  %s2300_s26 = smov (!%p307_p9), [#allocation4]  }
  0x12   : > { %s2569_s17 = scalar_lea.vmem (!%p307_p9), [#allocation4], %s1907_s16  ;;  %s1959_s16 = sshll.u32 (!%p307_p9), %s2375_s13, 9 }
  0x13   : > { %s2623_s24 = scalar_lea.hbm (!%p307_p9), %s2696_s9, %s1959_s16  ;;  %s2209_s27 = sshll.u32 (!%p307_p9), %s2300_s26, 4  ;;  %s2210_s27 = int_to_ptr.vmem [resolvable:$false] %s2209_s27 }
  0x15   : > { %s2404_s21 = scalar_select %p352_p10, %s2375_s13, 1  ;;  %vm364_vm0 = vcmask 261120   ;;  %v413_v14 = vld [vmem:[%s2691_s4 + $0x18] sm:$0xff]  ;;  %v412_v16 = vld [vmem:[%s2691_s4 + $0x10] sm:$0xff]  ;;  %v411_v18 = vld [vmem:[%s2691_s4 + $0x8] sm:$0xff]  ;;  %v2297_v46 = vmov 0.0  }
  0x16   : > { %v417_v15 = vld [vmem:[%s2691_s4 + $0x38] sm:$0xff]  ;;  %2016 = vmatprep.subr.mxu0 %v413_v14  ;;  %v416_v17 = vld [vmem:[%s2691_s4 + $0x30] sm:$0xff]  ;;  %v415_v19 = vld [vmem:[%s2691_s4 + $0x28] sm:$0xff]  ;;  %vm2298_vm1 = vmmov 0   ;;  %vm772_vm2 = vcmask 64512   ;;  %vm1089_vm3 = vcmask 130048  }
  0x17   : > { %s1957_s22 = sshll.u32 %s2404_s21, 4  ;;  %2027 = vmatprep.subr.mxu1 %v417_v15  ;;  %2017 = vmatpush3.msra.mxu0 %v413_v14  ;;  %v410_v20 = vld [vmem:[%s2691_s4] sm:$0xff]  ;;  %v421_v22 = vld [vmem:[%s2691_s4 + $0x58] sm:$0xff]  ;;  %v420_v40 = vld [vmem:[%s2691_s4 + $0x50] sm:$0xff] }
  0x18   : > { %s356_s25 = scalar_lea.vmem %s2687_s0, %s1957_s22  ;;  %2028 = vmatpush3.msra.mxu1 %v417_v15  ;;  %2018 = vmatprep.subr.mxu0 %v412_v16  ;;  %v414_v21 = vld [vmem:[%s2691_s4 + $0x20] sm:$0xff]  ;;  %v425_v23 = vld [vmem:[%s2691_s4 + $0x78] sm:$0xff]  ;;  %v424_v41 = vld [vmem:[%s2691_s4 + $0x70] sm:$0xff]  ;;  %s1958_s22 = sshll.u32 %s2404_s21, 5 }
  0x19   : > { %v362_v0 = vld [vmem:[%s356_s25] sm:$0xff]  ;;  %v363_v1 = vld [vmem:[%s356_s25 + $0x8] sm:$0xff]  ;;  %2029 = vmatprep.subr.mxu1 %v416_v17  ;;  %2019 = vmatpush3.msra.mxu0 %v412_v16  ;;  %s2497_s25 = scalar_lea.vmem %s2688_s1, %s1958_s22 }
  0x1a   : > { %v365_v2 = vsel %vm364_vm0, %v362_v0, 0.0  ;;  %v368_v3 = vsel %vm364_vm0, %v363_v1, 0.0  ;;  %2030 = vmatpush3.msra.mxu1 %v416_v17  ;;  %2020 = vmatprep.subr.mxu0 %v411_v18  ;;  %v1912_v31 = vld [vmem:[%s2689_s2] ss:$0 sm:$0xff]  ;;  %v419_v42 = vld [vmem:[%s2691_s4 + $0x48] sm:$0xff] }
  0x1b   : > { %366 = vadd.xlane.f32.xlu0 %v365_v2  ;;  %2031 = vmatprep.subr.mxu1 %v415_v19  ;;  %v1913_v33 = vld [vmem:[%s2690_s3] ss:$0 sm:$0xff]  ;;  %v423_v43 = vld [vmem:[%s2691_s4 + $0x68] sm:$0xff]  ;;  %v1923_v48 = vld [vmem:[%s2692_s5 + $0x1] ss:$0 sm:$0xff] }
  0x1c   : > { %2021 = vmatpush3.msra.mxu0 %v411_v18  ;;  %2032 = vmatpush3.msra.mxu1 %v415_v19  ;;  %v418_v44 = vld [vmem:[%s2691_s4 + $0x40] sm:$0xff]  ;;  %v769_v60 = vld [vmem:[%s2497_s25 + $0x8] sm:$0xff] }
  0x1d   : > { %2022 = vmatprep.subr.mxu0 %v410_v20  ;;  %2033 = vmatprep.subr.mxu1 %v414_v21  ;;  %v422_v45 = vld [vmem:[%s2691_s4 + $0x60] sm:$0xff] }
  0x1e   : > { %2023 = vmatpush3.msra.mxu0 %v410_v20  ;;  %2034 = vmatpush3.msra.mxu1 %v414_v21  ;;  %v1922_v47 = vld [vmem:[%s2692_s5] ss:$0 sm:$0xff]  ;;  %v1924_v57 = vld [vmem:[%s2692_s5 + $0x2] ss:$0 sm:$0xff]  ;;  %v1925_v58 = vld [vmem:[%s2692_s5 + $0x3] ss:$0 sm:$0xff] }
  0x1f   : > { %369 = vadd.xlane.f32.xlu0 %v368_v3  ;;  %2038 = vmatprep.subr.mxu0 %v421_v22  ;;  %v768_v59 = vld [vmem:[%s2497_s25] sm:$0xff] }
  0x20   : > { %2049 = vmatprep.subr.mxu1 %v425_v23 }
  0xa4   : > { %v367_v4 = vpop.xlane.xlu0 %366 }
  0xa5   : > { %v372_v5 = vmul.f32 0.03125, %v367_v4 }
  0xa7   : > { %v374_v6 = vsub.f32 %v362_v0, %v372_v5  ;;  %v770_v5 = vld [vmem:[%s2497_s25 + $0x10] sm:$0xff] }
  0xa8   : > { %v370_v7 = vpop.xlane.xlu0 %369 }
  0xa9   : > { %v373_v8 = vmul.f32 0.03125, %v370_v7  ;;  %v376_v9 = vmul.f32 %v374_v6, %v374_v6 }
  0xab   : > { %v375_v10 = vsub.f32 %v363_v1, %v373_v8  ;;  %v378_v11 = vsel %vm364_vm0, %v376_v9, 0.0 }
  0xac   : > { %379 = vadd.xlane.f32.xlu1 %v378_v11 }
  0xad   : > { %v377_v12 = vmul.f32 %v375_v10, %v375_v10 }
  0xaf   : > { %v381_v13 = vsel %vm364_vm0, %v377_v12, 0.0 }
  0xb0   : > { %382 = vadd.xlane.f32.xlu1 %v381_v13 }
 0x135   : > { %v380_v24 = vpop.xlane.xlu1 %379 }
 0x136   : > { %v384_v25 = vmul.f32 0.03125, %v380_v24 }
 0x138   : > { %v386_v26 = vadd.f32 1e-05, %v384_v25 }
 0x139   : > { %v383_v27 = vpop.xlane.xlu1 %382 }
 0x13a   : > { %2185 = vrsqrt.f32 %v386_v26  ;;  %v385_v28 = vmul.f32 0.03125, %v383_v27 }
 0x13c   : > { %v387_v29 = vadd.f32 1e-05, %v385_v28 }
 0x13e   : > { %2187 = vrsqrt.f32 %v387_v29 }
 0x147   : > { %v2186_v30 = vpop.eup %2185 }
 0x148   : > { %v390_v32 = vmul.f32 %v2186_v30, %v374_v6  ;;  %v771_v6 = vld [vmem:[%s2497_s25 + $0x18] sm:$0xff] }
 0x14a   : > { %v399_v34 = vmul.f32 %v1912_v31, %v390_v32 }
 0x14b   : > { %v2188_v35 = vpop.eup %2187 }
 0x14c   : > { %v408_v36 = vadd.f32 %v1913_v33, %v399_v34  ;;  %v391_v37 = vmul.f32 %v2188_v35, %v375_v10 }
 0x14e   : > { %2024 = vmatprep.mubr.msk.f32.mxu0 %vm364_vm0, %v408_v36  ;;  %2035 = vmatprep.mubr.msk.f32.mxu1 %vm364_vm0, %v408_v36  ;;  %v400_v38 = vmul.f32 %v1912_v31, %v391_v37 }
 0x150   : > { %v409_v39 = vadd.f32 %v1913_v33, %v400_v38 }
 0x152   : > { %2025 = vmatmul.mubr.msk.f32.vlgmr.msra.gmra.mxu0 %vm364_vm0, %v409_v39  ;;  %2036 = vmatmul.mubr.msk.f32.vlgmr.msra.gmra.mxu1 %vm364_vm0, %v409_v39 }
 0x153   : > { %2039 = vmatpush3.msra.mxu0 %v421_v22  ;;  %2050 = vmatpush3.msra.mxu1 %v425_v23 }
 0x154   : > { %2040 = vmatprep.subr.mxu0 %v420_v40  ;;  %2046 = vmatprep.mubr.msk.f32.mxu0 %vm364_vm0, %v408_v36 }
 0x155   : > { %2051 = vmatprep.subr.mxu1 %v424_v41  ;;  %2057 = vmatprep.mubr.msk.f32.mxu1 %vm364_vm0, %v408_v36 }
 0x156   : > { %2041 = vmatpush3.msra.mxu0 %v420_v40  ;;  %2052 = vmatpush3.msra.mxu1 %v424_v41 }
 0x157   : > { %2042 = vmatprep.subr.mxu0 %v419_v42  ;;  %2053 = vmatprep.subr.mxu1 %v423_v43 }
 0x158   : > { %2043 = vmatpush3.msra.mxu0 %v419_v42  ;;  %2054 = vmatpush3.msra.mxu1 %v423_v43 }
 0x159   : > { %2044 = vmatprep.subr.mxu0 %v418_v44  ;;  %2055 = vmatprep.subr.mxu1 %v422_v45 }
 0x15a   : > { %2045 = vmatpush3.msra.mxu0 %v418_v44  ;;  %2056 = vmatpush3.msra.mxu1 %v422_v45 }
 0x15b   : > { %2047 = vmatmul.mubr.msk.f32.vlgmr.msra.gmra.mxu0 %vm364_vm0, %v409_v39  ;;  %2058 = vmatmul.mubr.msk.f32.vlgmr.msra.gmra.mxu1 %vm364_vm0, %v409_v39 }
 0x15c   : > { %2060 = vmatprep.subr.mxu0 %v2297_v46  ;;  %2067 = vmatprep.subr.mxu1 %v2297_v46 }
 0x15d   : > { %2064 = vmatprep.mubr.msk.f32.mxu0 %vm2298_vm1, %v2297_v46  ;;  %2071 = vmatprep.mubr.msk.f32.mxu1 %vm2298_vm1, %v2297_v46 }
 0x212   : > { %v2026_v49 = vpop.f32.mrf.mxu0  ;;  %v2037_v50 = vpop.f32.mrf.mxu1 }
 0x213   : > { %v2489_v51 = vadd.f32 %v2026_v49, %v1922_v47  ;;  %v763_v52 = vadd.f32 %v2037_v50, %v1923_v48 }
 0x214   : > { %v498_v53 = vpop.f32.mrf.mxu0  ;;  %v573_v54 = vpop.f32.mrf.mxu1 }
 0x215   : > { %2061 = vmatpush3.xpose.msk.msra.mxu0 %vm772_vm2, %v2489_v51  ;;  %2068 = vmatpush3.xpose.msk.msra.mxu1 %vm772_vm2, %v763_v52  ;;  %v760_v55 = vadd.f32 %v1922_v47, %v498_v53  ;;  %v762_v56 = vadd.f32 %v1923_v48, %v573_v54 }
 0x216   : > { %2062 = vmatprep.subr.mxu0 %v2297_v46  ;;  %2069 = vmatprep.subr.mxu1 %v2297_v46 }
 0x219   : > { %2063 = vmatpush3.xpose.msk.msra.mxu0 %vm772_vm2, %v760_v55  ;;  %2070 = vmatpush3.xpose.msk.msra.mxu1 %vm772_vm2, %v762_v56 }
 0x21a   : > { %2074 = vmatprep.subr.mxu0 %v2297_v46  ;;  %2081 = vmatprep.subr.mxu1 %v2297_v46 }
 0x21b   : > { %v2048_v61 = vpop.f32.mrf.mxu0  ;;  %v2059_v62 = vpop.f32.mrf.mxu1 }
 0x21c   : > { %v765_v63 = vadd.f32 %v2048_v61, %v1924_v57  ;;  %v2513_v0 = vadd.f32 %v2059_v62, %v1925_v58  ;;  %2065 = vmatmul.mubr.msk.f32.vlgmr.msra.gmra.mxu0 %vm772_vm2, %v768_v59  ;;  %2072 = vmatmul.mubr.msk.f32.vlgmr.msra.gmra.mxu1 %vm772_vm2, %v769_v60  ;;  %v1942_v60 = vld [vmem:[%s2693_s6 + $0x8] sm:$0xff]  ;;  %v1454_v61 = vld [vmem:[%s2693_s6] sm:$0xff]  ;;  %v1945_v62 = vld [vmem:[%s2693_s6 + $0x10] sm:$0xff] }
 0x21d   : > { %v648_v1 = vpop.f32.mrf.mxu0  ;;  %v723_v2 = vpop.f32.mrf.mxu1  ;;  %2078 = vmatprep.mubr.msk.f32.mxu0 %vm2298_vm1, %v2297_v46  ;;  %2085 = vmatprep.mubr.msk.f32.mxu1 %vm2298_vm1, %v2297_v46 }
 0x21e   : > { %2075 = vmatpush3.xpose.msk.msra.mxu0 %vm772_vm2, %v765_v63  ;;  %2082 = vmatpush3.xpose.msk.msra.mxu1 %vm772_vm2, %v2513_v0  ;;  %v764_v3 = vadd.f32 %v1924_v57, %v648_v1  ;;  %v2526_v4 = vadd.f32 %v1925_v58, %v723_v2 }
 0x21f   : > { %2076 = vmatprep.subr.mxu0 %v2297_v46  ;;  %2083 = vmatprep.subr.mxu1 %v2297_v46 }
 0x222   : > { %2077 = vmatpush3.xpose.msk.msra.mxu0 %vm772_vm2, %v764_v3  ;;  %2084 = vmatpush3.xpose.msk.msra.mxu1 %vm772_vm2, %v2526_v4 }
 0x223   : > { %2095 = vmatprep.subr.mxu1 %v2297_v46  ;;  %2088 = vmatprep.subr.mxu0 %v2297_v46 }
 0x225   : > { %2079 = vmatmul.mubr.msk.f32.vlgmr.msra.gmra.mxu0 %vm772_vm2, %v770_v5  ;;  %2086 = vmatmul.mubr.msk.f32.vlgmr.msra.gmra.mxu1 %vm772_vm2, %v771_v6 }
 0x226   : > { %2092 = vmatprep.mubr.msk.f32.mxu0 %vm2298_vm1, %v2297_v46  ;;  %2099 = vmatprep.mubr.msk.f32.mxu1 %vm2298_vm1, %v2297_v46 }
 0x2dc   : > { %v848_v7 = vpop.f32.mrf.mxu0  ;;  %v927_v8 = vpop.f32.mrf.mxu1 }
 0x2dd   : > { %v1093_v9 = vsel %vm1089_vm3, %v927_v8, -inf  ;;  %v1090_v10 = vsel %vm1089_vm3, %v848_v7, -inf }
 0x2de   : > { %1094 = vmax.xlane.f32.xlu1 %v1093_v9  ;;  %1091 = vmax.xlane.f32.xlu0 %v1090_v10  ;;  %v2066_v11 = vpop.f32.mrf.mxu0  ;;  %v2073_v12 = vpop.f32.mrf.mxu1 }
 0x2e5   : > { %v1006_v13 = vpop.f32.mrf.mxu0  ;;  %v1085_v14 = vpop.f32.mrf.mxu1 }
 0x2e6   : > { %v1099_v15 = vsel %vm1089_vm3, %v1085_v14, -inf  ;;  %v1096_v16 = vsel %vm1089_vm3, %v1006_v13, -inf }
 0x2e7   : > { %1100 = vmax.xlane.f32.xlu1 %v1099_v15  ;;  %v2087_v17 = vpop.f32.mrf.mxu1  ;;  %1097 = vmax.xlane.f32.xlu0 %v1096_v16  ;;  %v2080_v18 = vpop.f32.mrf.mxu0 }
 0x2f8   : > { %1219 = vrot.lane.b32.xlu1 %v763_v52, %s2299_s29 }
 0x2fc   : > { %1138 = vrot.lane.b32.xlu1 %v760_v55, %s2299_s29 }
 0x2fd   : > { %1140 = vrot.lane.b32.xlu0 %v2489_v51, %s2299_s29 }
 0x300   : > { %1217 = vrot.lane.b32.xlu1 %v762_v56, %s2299_s29 }
 0x301   : > { %1298 = vrot.lane.b32.xlu0 %v765_v63, %s2299_s29 }
 0x304   : > { %1296 = vrot.lane.b32.xlu1 %v764_v3, %s2299_s29 }
 0x367   : > { %v1095_v19 = vpop.xlane.xlu1 %1094  ;;  %v1092_v20 = vpop.xlane.xlu0 %1091 }
 0x368   : > { %v1103_v21 = vsub.f32 %v927_v8, %v1095_v19  ;;  %v1102_v22 = vsub.f32 %v848_v7, %v1092_v20 }
 0x36a   : > { %v1108_v23 = vmul.f32 1.442695, %v1103_v21  ;;  %v1106_v24 = vmul.f32 1.442695, %v1102_v22 }
 0x36c   : > { %2189 = vpow2.f32 %v1108_v23 }
 0x36d   : > { %2191 = vpow2.f32 %v1106_v24 }
 0x370   : > { %v1101_v25 = vpop.xlane.xlu1 %1100  ;;  %v1098_v26 = vpop.xlane.xlu0 %1097 }
 0x371   : > { %v1105_v27 = vsub.f32 %v1085_v14, %v1101_v25  ;;  %v1104_v28 = vsub.f32 %v1006_v13, %v1098_v26 }
 0x373   : > { %v1112_v29 = vmul.f32 1.442695, %v1105_v27  ;;  %v1110_v30 = vmul.f32 1.442695, %v1104_v28 }
 0x374   : > { %v1220_v31 = vpop.permute.xlu1 %1219  ;;  %v1141_v32 = vpop.permute.xlu0 %1140 }
 0x375   : > { %2193 = vpow2.f32 %v1112_v29  ;;  %2089 = vmatpush3.msra.mxu0 %v1141_v32  ;;  %2096 = vmatpush3.msra.mxu1 %v1220_v31 }
 0x376   : > { %2195 = vpow2.f32 %v1110_v30  ;;  %2090 = vmatprep.subr.mxu0 %v2297_v46  ;;  %2097 = vmatprep.subr.mxu1 %v2297_v46 }
 0x378   : > { %v1139_v33 = vpop.permute.xlu1 %1138  ;;  %v1299_v44 = vpop.permute.xlu0 %1298 }
 0x379   : > { %v2190_v34 = vpop.eup %2189  ;;  %2091 = vmatpush3.msra.mxu0 %v1139_v33 }
 0x37a   : > { %v2192_v35 = vpop.eup %2191  ;;  %v1117_v36 = vsel %vm1089_vm3, %v2190_v34, 0.0  ;;  %2102 = vmatprep.subr.mxu0 %v2297_v46 }
 0x37b   : > { %1118 = vadd.xlane.f32.xlu1 %v1117_v36  ;;  %v1114_v37 = vsel %vm1089_vm3, %v2192_v35, 0.0 }
 0x37c   : > { %v1218_v38 = vpop.permute.xlu1 %1217  ;;  %1115 = vadd.xlane.f32.xlu0 %v1114_v37 }
 0x37d   : > { %2098 = vmatpush3.msra.mxu1 %v1218_v38 }
 0x37e   : > { %2109 = vmatprep.subr.mxu1 %v2297_v46 }
 0x380   : > { %v1297_v43 = vpop.permute.xlu1 %1296 }
 0x382   : > { %v2194_v39 = vpop.eup %2193 }
 0x383   : > { %v2196_v40 = vpop.eup %2195  ;;  %v1123_v41 = vsel %vm1089_vm3, %v2194_v39, 0.0 }
 0x384   : > { %1124 = vadd.xlane.f32.xlu1 %v1123_v41  ;;  %v1120_v42 = vsel %vm1089_vm3, %v2196_v40, 0.0 }
 0x385   : > { %1121 = vadd.xlane.f32.xlu0 %v1120_v42 }
 0x395   : > { %1375 = vrot.lane.b32.xlu1 %v2526_v4, %s2299_s29 }
 0x39b   : > { %1377 = vrot.lane.b32.xlu0 %v2513_v0, %s2299_s29  ;;  %v1947_v0 = vld [vmem:[%s2693_s6 + $0x18] sm:$0xff]  ;;  %s1796_s29 = sshll.u32 %s2569_s17, 4  ;;  %s2618_s29 = int_to_ptr.vmem [resolvable:$true] %s1796_s29 }
 0x39c   : > { %s2205_s21 = scalar_lea.vmem %s2618_s29, 512  ;;  %p2212_p0 = scmp.lt.s32.totalorder %s2618_s29, %s2210_s27 }
 0x39d   : > { %p2206_p11 = scmp.ne.s32.totalorder %s2618_s29, %s2205_s21 }
 0x39f   : > { %p2207_p12 = pnand %p2206_p11, %p2392_p5 }
 0x3a1   : > { %p2208_p13 = pneg %p2207_p12 }
 0x404   : > { %v1119_v45 = vpop.xlane.xlu1 %1118 }
 0x405   : > { %2197 = vrcp.f32 %v1119_v45  ;;  %v1116_v47 = vpop.xlane.xlu0 %1115 }
 0x406   : > { %2199 = vrcp.f32 %v1116_v47 }
 0x40d   : > { %v1125_v48 = vpop.xlane.xlu1 %1124 }
 0x40e   : > { %2201 = vrcp.f32 %v1125_v48  ;;  %v1122_v49 = vpop.xlane.xlu0 %1121 }
 0x40f   : > { %2203 = vrcp.f32 %v1122_v49 }
 0x411   : > { %v1376_v55 = vpop.permute.xlu1 %1375 }
 0x412   : > { %v2198_v50 = vpop.eup %2197  ;;  %v1378_v54 = vpop.permute.xlu0 %1377 }
 0x413   : > { %v2200_v51 = vpop.eup %2199  ;;  %v1131_v52 = vmul.f32 %v2198_v50, %v2190_v34 }
 0x414   : > { %v1130_v53 = vmul.f32 %v2200_v51, %v2192_v35 }
 0x415   : > { %2100 = vmatmul.mubr.msk.f32.vlgmr.msra.gmra.mxu1 %vm1089_vm3, %v1131_v52  ;;  %1135 = vst.msk [vmem:[%s2569_s17 + $0x8] sm:$0xff] %vm1089_vm3, %v1131_v52 }
 0x416   : > { %2093 = vmatmul.mubr.msk.f32.vlgmr.msra.gmra.mxu0 %vm1089_vm3, %v1130_v53  ;;  %2110 = vmatpush3.msra.mxu1 %v1378_v54  ;;  %1134 = vst.msk [vmem:[%s2569_s17] sm:$0xff] %vm1089_vm3, %v1130_v53 }
 0x417   : > { %2103 = vmatpush3.msra.mxu0 %v1299_v44  ;;  %2111 = vmatprep.subr.mxu1 %v2297_v46 }
 0x418   : > { %2104 = vmatprep.subr.mxu0 %v2297_v46  ;;  %2112 = vmatpush3.msra.mxu1 %v1376_v55 }
 0x419   : > { %2105 = vmatpush3.msra.mxu0 %v1297_v43  ;;  %2106 = vmatprep.mubr.msk.f32.mxu0 %vm2298_vm1, %v2297_v46 }
 0x41a   : > { %2113 = vmatprep.mubr.msk.f32.mxu1 %vm2298_vm1, %v2297_v46  ;;  %2116 = vmatprep.subr.mxu0 %v2297_v46 }
 0x41b   : > { %v2202_v56 = vpop.eup %2201  ;;  %2121 = vmatprep.subr.mxu1 %v2297_v46 }
 0x41c   : > { %v2204_v57 = vpop.eup %2203  ;;  %v1133_v58 = vmul.f32 %v2202_v56, %v2194_v39 }
 0x41d   : > { %v1132_v59 = vmul.f32 %v2204_v57, %v2196_v40 }
 0x41e   : > { %2114 = vmatmul.mubr.msk.f32.vlgmr.msra.gmra.mxu1 %vm1089_vm3, %v1133_v58  ;;  %1137 = vst.msk [vmem:[%s2569_s17 + $0x18] sm:$0xff] %vm1089_vm3, %v1133_v58 }
 0x41f   : > { %2107 = vmatmul.mubr.msk.f32.vlgmr.msra.gmra.mxu0 %vm1089_vm3, %v1132_v59  ;;  %2123 = vmatprep.mubr.msk.f32.mxu1 %vm2298_vm1, %v2297_v46  ;;  %1136 = vst.msk [vmem:[%s2569_s17 + $0x10] sm:$0xff] %vm1089_vm3, %v1132_v59  ;;  %s2211_s17 = scalar_lea.vmem %s2210_s27, 1024 }
 0x420   : > { %2118 = vmatprep.mubr.msk.f32.mxu0 %vm2298_vm1, %v2297_v46  ;;  %2117 = vmatpush3.msra.mxu0 %v1942_v60  ;;  %p2213_p1 = scmp.lt.s32.totalorder %s2211_s17, %s2205_s21 }
 0x421   : > { %2122 = vmatpush3.msra.mxu1 %v1454_v61  ;;  %2126 = vmatprep.subr.mxu0 %v2297_v46 }
 0x422   : > { %2131 = vmatprep.subr.mxu1 %v2297_v46  ;;  %p2214_p2 = por %p2213_p1, %p2212_p0 }
 0x424   : > { %p2215_p3 = pnand %p2214_p2, %p2208_p13 }
 0x4d5   : > { %v1292_v63 = vpop.f32.mrf.mxu1 }
 0x4d6   : > { %v1213_v1 = vpop.f32.mrf.mxu0  ;;  %2119 = vmatmul.mubr.msk.f32.vlgmr.msra.gmra.mxu0 %vm772_vm2, %v1292_v63 }
 0x4d7   : > { %2124 = vmatmul.mubr.msk.f32.vlgmr.msra.gmra.mxu1 %vm772_vm2, %v1213_v1  ;;  %v2101_v2 = vpop.f32.mrf.mxu1  ;;  %2127 = vmatpush3.msra.mxu0 %v1945_v62 }
 0x4d8   : > { %v2094_v3 = vpop.f32.mrf.mxu0  ;;  %2132 = vmatpush3.msra.mxu1 %v1947_v0  ;;  %2128 = vmatprep.mubr.msk.f32.mxu0 %vm2298_vm1, %v2297_v46 }
 0x4d9   : > { %2133 = vmatprep.mubr.msk.f32.mxu1 %vm2298_vm1, %v2297_v46 }
 0x4de   : > { %v1450_v4 = vpop.f32.mrf.mxu1 }
 0x4df   : > { %v1371_v5 = vpop.f32.mrf.mxu0  ;;  %2134 = vmatmul.mubr.msk.f32.vlgmr.msra.gmra.mxu1 %vm772_vm2, %v1450_v4 }
 0x4e0   : > { %2129 = vmatmul.mubr.msk.f32.vlgmr.msra.gmra.mxu0 %vm772_vm2, %v1371_v5  ;;  %v2115_v6 = vpop.f32.mrf.mxu1 }
 0x4e1   : > { %v2108_v7 = vpop.f32.mrf.mxu0 }
 0x4e2   : > { %2218 = shalt.err (!%p2215_p3)
}
 0x4e3   : > { %s2219_s28 = scalar_lea.hbm %s2623_s24, 512  ;;  %s2223_s23 = scalar_lea.hbm %s2696_s9, 1024 }
 0x4e4   : > { %p2220_p4 = scmp.ne.s32.totalorder %s2623_s24, %s2219_s28  ;;  %p2224_p9 = scmp.lt.s32.totalorder %s2623_s24, %s2696_s9 }
 0x4e5   : > { %p2225_p10 = scmp.lt.s32.totalorder %s2223_s23, %s2219_s28 }
 0x4e6   : > { %p2221_p7 = pnand %p2220_p4, %p2392_p5 }
 0x4e7   : > { %p2226_p11 = por %p2225_p10, %p2224_p9 }
 0x4e8   : > { %p2222_p8 = pneg %p2221_p7 }
 0x4ea   : > { %p2227_p12 = pnand %p2226_p11, %p2222_p8 }
 0x4ec   : > { %2230 = shalt.err (!%p2227_p12)
}
 0x4ed   : > { %s2301_s21 = smov 128   ;;  %s2302_s27 = smov 8   ;;  %v1949_v16 = vld [vmem:[%s2694_s7] ss:$0 sm:$0xff] }
 0x4ee   : > { %s2699_s17 = scalar_lea.sflag [#allocation5], %s2565_s14  ;;  %s1906_s25 = sshll.u32 %s2565_s14, 3 }
 0x4ef   : > { %2137 = dma.vmem_to_hbm [thread:$0]  (%p2392_p5), %s2618_s29, 512, %s2623_s24, %s2699_s17, %s2301_s21, %s2301_s21, %s2302_s27  }
 0x4f0   : > { %s1952_s22 = sshll.u32 %s2375_s13, 7  ;;  %s344_s23 = scalar_lea.vmem [#allocation2], %s1906_s25 }
 0x4f1   : > { %s1783_s29 = sshll.u32 %s344_s23, 4  ;;  %s1781_s21 = scalar_lea.hbm %s2695_s8, %s1952_s22  ;;  %s1784_s29 = int_to_ptr.vmem [resolvable:$true] %s1783_s29 }
 0x4f2   : > { %s1765_s27 = scalar_lea.sflag [#allocation3], %s2565_s14  ;;  %s2231_s17 = scalar_lea.vmem %s1784_s29, 128 }
 0x4f3   : > { %p2232_p13 = scmp.ne.s32.totalorder %s1784_s29, %s2231_s17  ;;  %s2303_s28 = smov [#allocation2]  }
 0x4f4   : > { %s2235_s16 = sshll.u32 %s2303_s28, 4  ;;  %s2236_s16 = int_to_ptr.vmem [resolvable:$false] %s2235_s16 }
 0x4f5   : > { %p2233_p0 = pnand %p2232_p13, %p2392_p5  ;;  %s2237_s13 = scalar_lea.vmem %s2236_s16, 256 }
 0x4f6   : > { %p2238_p2 = scmp.lt.s32.totalorder %s1784_s29, %s2236_s16  ;;  %p2239_p3 = scmp.lt.s32.totalorder %s2237_s13, %s2231_s17 }
 0x4f7   : > { %p2234_p1 = pneg %p2233_p0 }
 0x4f8   : > { %p2240_p4 = por %p2239_p3, %p2238_p2 }
 0x4fa   : > { %p2241_p7 = pnand %p2240_p4, %p2234_p1 }
 0x596   : > { %v1526_v46 = vpop.f32.mrf.mxu0 }
 0x597   : > { %v1599_v8 = vpop.f32.mrf.mxu1 }
 0x598   : > { %v2120_v9 = vpop.f32.mrf.mxu0  ;;  %v1600_v11 = vadd.f32 %v1599_v8, %v1526_v46 }
 0x599   : > { %v2125_v10 = vpop.f32.mrf.mxu1 }
 0x59f   : > { %v1750_v12 = vpop.f32.mrf.mxu1 }
 0x5a0   : > { %v1674_v13 = vpop.f32.mrf.mxu0 }
 0x5a1   : > { %v1678_v14 = vadd.f32 %v1674_v13, %v1600_v11  ;;  %v2135_v15 = vpop.f32.mrf.mxu1 }
 0x5a2   : > { %v2130_v17 = vpop.f32.mrf.mxu0 }
 0x5a3   : > { %v1754_v18 = vadd.f32 %v1750_v12, %v1678_v14 }
 0x5a5   : > { %v1762_v19 = vadd.f32 %v1949_v16, %v1754_v18 }
 0x5a7   : > { %1763 = vst.msk [vmem:[%s344_s23] sm:$0xff] %vm364_vm0, %v1762_v19 }
 0x5a8   : > { %2244 = shalt.err (!%p2241_p7)
}
 0x5a9   : > { %s2245_s25 = scalar_lea.hbm %s1781_s21, 128  ;;  %s2249_s23 = scalar_lea.hbm %s2695_s8, 256 }
 0x5aa   : > { %p2246_p8 = scmp.ne.s32.totalorder %s1781_s21, %s2245_s25  ;;  %p2250_p11 = scmp.lt.s32.totalorder %s1781_s21, %s2695_s8 }
 0x5ab   : > { %p2251_p12 = scmp.lt.s32.totalorder %s2249_s23, %s2245_s25 }
 0x5ac   : > { %p2247_p9 = pnand %p2246_p8, %p2392_p5 }
 0x5ad   : > { %p2252_p13 = por %p2251_p12, %p2250_p11 }
 0x5ae   : > { %p2248_p10 = pneg %p2247_p9 }
 0x5b0   : > { %p2253_p0 = pnand %p2252_p13, %p2248_p10 }
 0x5b2   : > { %2256 = shalt.err (!%p2253_p0)
}
 0x5b3   : > { %2136 = dma.vmem_to_hbm [thread:$0]  (%p2392_p5), %s1784_s29, 128, %s1781_s21, %s1765_s27  }
 0x5b4 PF: > { %p2147_p1 = scmp.ge.s32.totalorder %s2295_s12, 2  ;;  %s1811_s17 = sand.u32 1, %s2283_s30  }
 0x5b5   : > { %s1812_s28 = scalar_lea.sflag [#allocation3], %s1811_s17 }
 0x5b6   : > { %p2141_p2 = pnand %p2147_p1, %p2396_p6 }
 0x5b8   : > { %p2142_p3 = pneg %p2141_p2 }
 0x5ba   : > { %2274 = dma.done.wait (%p2142_p3), %s1812_s28, 128  }
 0x5bb   : > { %2276 = vsyncadd (%p2142_p3), %s1812_s28, 4294967168  ;;  %s1821_s16 = scalar_lea.sflag [#allocation5], %s1811_s17 }
 0x5bc   : > { %2278 = dma.done.wait (%p2142_p3), %s1821_s16, 512  }
 0x5bd   : > { %2280 = vsyncadd (%p2142_p3), %s1821_s16, 4294966784  ;;  %p23_p5 = scmp.ge.s32.totalorder %s2379_s15, 4   ;;  %s2700_s30 = smov %s2287_s10 }
 0x5be   : > { %s2701_s10 = smov %s2291_s11  ;;  %s2702_s11 = smov %s2390_s18 }
 0x5bf   : > { %s2703_s12 = smov %s2379_s15  ;;  %25 = sbr.rel (!%p23_p5) target bundleno = 5 (0x5), region = 110 }
 0x5c4   :  { %1826 = vsyncpa [#allocation3], 1 }
 0x5c5   :  { %1828 = vsyncpa [#allocation3 + $0x1], 1 }
 0x5c6   :  { %1829 = vsyncpa [#allocation5], 1 }
 0x5c7   :  { %1831 = vsyncpa [#allocation5 + $0x1], 1 }

</bundles_post_ra>
